<compile_context>
chip_gen: v7x
topology: tpu7x:2x2x1
jax: 0.10.0
libtpu: 0.0.40
codegen_flags: <defaults>
</compile_context>

<pallas_src>
import numpy as np
import jax
import jax.numpy as jnp
from jax.experimental import pallas as pl
from jax.experimental.pallas import tpu as pltpu

_H = _W = 16


# ------------------------------------------------------------------
# Host-side packing of conv weights into banded matmul form
# ------------------------------------------------------------------

def _conv1_band(w1):
    """w1: [8,1,3,3] torch layout -> [16, 3*128] banded weight.

    Column block di*128 + w*8 + co holds W1[co, 0, di, dj] at row wq = w + dj - 1;
    out-of-range columns are omitted, which implements the horizontal zero padding."""
    m = np.zeros((3, 16, 128), np.float32)
    for di in range(3):
        for w_out in range(16):
            for dj in range(3):
                wq = w_out + dj - 1
                if 0 <= wq < 16:
                    m[di, wq, w_out * 8:(w_out + 1) * 8] = w1[:, 0, di, dj]
    return np.concatenate([m[0], m[1], m[2]], axis=1)          # [16, 384]


def _conv2_band(w2):
    """w2: [16,8,3,3] torch layout -> [128, 3*128] banded weight with the stride-2
    column subsampling folded in (output lane = wo*16 + co, wo in 0..7)."""
    n = np.zeros((3, 128, 128), np.float32)
    for di in range(3):
        for wo in range(8):
            for dj in range(3):
                wq = 2 * wo + dj - 1
                if 0 <= wq < 16:
                    n[di, wq * 8:(wq + 1) * 8, wo * 16:(wo + 1) * 16] = w2[:, :, di, dj].T
    return np.concatenate([n[0], n[1], n[2]], axis=1)          # [128, 384]


# ------------------------------------------------------------------
# Fused forward kernel (everything in one pallas_call, no scratch)
# ------------------------------------------------------------------

def _fused_forward_kernel(
    x_ref,                  # [bb, 16, 16]  OCT image, channel squeezed (conv dtype)
    vf_ref,                 # [bb, 54]      f32
    w1b_ref, b1_ref,        # conv1 band: [16, 384] (conv dtype), bias [1, 128] f32
    w2b_ref, b2_ref,        # conv2 band: [128, 384] (conv dtype), bias [1, 128] f32
    pwo_ref, bo_ref,        # GAP (x) oct_fc: [128, 40], [1, 40]
    wv1_ref, bv1_ref,       # vf fc1: [54, 64], [1, 64]
    wv2_ref, bv2_ref,       # vf fc2: [64, 40], [1, 40]
    wao_ref, wav_ref, ba_ref,      # attention (split): [40, 40], [40, 40], [1, 40]
    wf1o_ref, wf1v_ref, bf1_ref,   # fc1 (split): [40, 32], [40, 32], [1, 32]
    wf2_ref, bf2_ref,              # fc2 (lane-padded): [32, 128], [1, 128]
    out_ref,                # [bb, 128]  (logits live in lanes 0:2)
):
    bb = x_ref.shape[0]
    f32 = jnp.float32
    cdt = x_ref.dtype

    def shift_add(z):
        # z: [bb*16, 384] per-row-tap partial conv results (128-lane blocks = di 0,1,2).
        # Returns sum_di Z_di[b, h+di-1, :] with zero rows outside the image (== the
        # 3x3 conv's vertical taps + vertical zero padding).  Shape [bb, 16, 128].
        za = z[:, 0:128].reshape(bb, 16, 128)
        zb = z[:, 128:256].reshape(bb, 16, 128)
        zc = z[:, 256:384].reshape(bb, 16, 128)
        zero = jnp.zeros((bb, 1, 128), f32)
        down = jnp.concatenate([zero, za[:, 0:15, :]], axis=1)   # Z_0[b, h-1, :]
        up = jnp.concatenate([zc[:, 1:16, :], zero], axis=1)     # Z_2[b, h+1, :]
        return zb + down + up

    # ---- conv1 (1->8, 3x3, s1, p1) + ReLU: one banded matmul + vertical shift-add.
    # Result is lane-dense: [bb, 16, 128] with lane = w*8 + c_out.
    t1 = jnp.dot(x_ref[...].reshape(bb * 16, 16), w1b_ref[...],
                 preferred_element_type=f32)                       # [bb*16, 384]
    a1 = jnp.maximum(shift_add(t1) + b1_ref[...], 0.0)            # [bb, 16, 128]

    # ---- conv2 (8->16, 3x3, s2, p1) + ReLU.  Stride-2 columns are folded into the band
    # weights (lane = wo*16 + c_out); rows are computed at stride 1 and the even ones are
    # selected by the pooling mask below.
    t2 = jnp.dot(a1.astype(cdt).reshape(bb * 16, 128), w2b_ref[...],
                 preferred_element_type=f32)                       # [bb*16, 384]
    a2 = jnp.maximum(shift_add(t2) + b2_ref[...], 0.0)            # [bb, 16, 128]

    # ---- stride-2 row select + GAP + Linear(16->40): the 1/64 scale and the fc weight
    # are folded into pwo; only an even-row mask + sublane reduction remain in-kernel.
    hmask = (jax.lax.broadcasted_iota(jnp.int32, (16, 128), 0) % 2 == 0).astype(f32)
    r1 = jnp.sum(a2 * hmask[None], axis=1)                         # [bb, 128]
    oct_fea = jnp.maximum(
        jnp.dot(r1, pwo_ref[...], preferred_element_type=f32) + bo_ref[...], 0.0)

    # ---- VF extractor: 54 -> 64 -> 40, ReLU ----
    v = jnp.maximum(
        jnp.dot(vf_ref[...], wv1_ref[...], preferred_element_type=f32) + bv1_ref[...], 0.0)
    vf_fea = jnp.maximum(
        jnp.dot(v, wv2_ref[...], preferred_element_type=f32) + bv2_ref[...], 0.0)

    # ---- attention fusion, concat-free (Linear(80->40) as split matmuls) ----
    att = (jnp.dot(oct_fea, wao_ref[...], preferred_element_type=f32)
           + jnp.dot(vf_fea, wav_ref[...], preferred_element_type=f32) + ba_ref[...])
    alpha = jax.nn.sigmoid(att)                                    # [bb, 40]
    go = alpha * oct_fea
    gv = (1.0 - alpha) * vf_fea

    # ---- FC head: Linear(80->32)+ReLU split over the fusion halves, Linear(32->2) padded.
    h = jnp.maximum(
        jnp.dot(go, wf1o_ref[...], preferred_element_type=f32)
        + jnp.dot(gv, wf1v_ref[...], preferred_element_type=f32) + bf1_ref[...], 0.0)
    out = jnp.dot(h, wf2_ref[...], preferred_element_type=f32) + bf2_ref[...]
    out_ref[...] = out.astype(out_ref.dtype)                       # [bb, 128]


# ------------------------------------------------------------------
# Wrapper
# ------------------------------------------------------------------

_WEIGHT_KEYS = (
    "conv1_band", "conv1_b", "conv2_band", "conv2_b",
    "oct_pwo", "oct_fc_b",
    "vf_fc1_w", "vf_fc1_b", "vf_fc2_w", "vf_fc2_b",
    "att_w_oct", "att_w_vf", "att_b",
    "fc1_w_oct", "fc1_w_vf", "fc1_b",
    "fc2_w_pad", "fc2_b_pad",
)


def _pick_batch_block(B):
    # Multiple-of-8 tile with grid >= 2 when possible: bounds per-step VMEM, lets the
    # pipeline prefetch step i+1's inputs while computing step i, and gives the
    # "parallel" batch axis something to shard across TensorCores.
    for bb in (32, 16, 8):
        if B % bb == 0 and B // bb >= 2:
            return bb
    return B


def _const_index_map(ndim):
    zeros = (0,) * ndim
    return lambda i: zeros


def vfoct_attention_forward(params, oct_in, vf_in, *, batch_block=None):
    B = oct_in.shape[0]
    bb = _pick_batch_block(B) if batch_block is None else batch_block
    assert B % bb == 0, "batch tile must divide the batch size"

    conv_dtype = params["conv1_band"].dtype
    # Cheap input prep: drop the channel dim and cast.  All padding is handled by the
    # banded conv weights (horizontal) / in-kernel shift-add (vertical).
    x = oct_in[:, 0, :, :].astype(conv_dtype)                      # [B, 16, 16]
    vf = vf_in.astype(jnp.float32)

    weight_specs = [pl.BlockSpec(params[k].shape, _const_index_map(params[k].ndim))
                    for k in _WEIGHT_KEYS]

    out_padded = pl.pallas_call(
        _fused_forward_kernel,
        out_shape=jax.ShapeDtypeStruct((B, 128), jnp.float32),
        grid=(B // bb,),
        in_specs=[
            pl.BlockSpec((bb, _H, _W), lambda i: (i, 0, 0)),
            pl.BlockSpec((bb, 54), lambda i: (i, 0)),
        ] + weight_specs,
        out_specs=pl.BlockSpec((bb, 128), lambda i: (i, 0)),
        compiler_params=pltpu.CompilerParams(
            dimension_semantics=("parallel",),
            # Explicit scoped-VMEM budget; per-step usage is ~1-2 MiB at bb=32, so this
            # is comfortably within every generation's physical VMEM (incl. v7x 64 MiB).
            vmem_limit_bytes=32 * 1024 * 1024,
        ),
    )(x, vf, *[params[k] for k in _WEIGHT_KEYS])

    return out_padded[:, :2]


# ------------------------------------------------------------------
# Parameters (deterministic synthetic init; conv weights repacked into band form)
# ------------------------------------------------------------------

def init_params(key, conv_dtype=jnp.bfloat16):
    ks = jax.random.split(key, 16)

    def w(k, shape, fan_in):
        return jax.random.normal(k, shape, jnp.float32) * (2.0 / fan_in) ** 0.5

    def b(k, n):
        return 0.3 * jax.random.normal(k, (1, n), jnp.float32)

    # Raw (torch-layout) weights, kept under "_raw" for the pure-JAX reference; real
    # checkpoints would be re-packed through the same band builders.
    conv1_w = w(ks[0], (8, 1, 3, 3), 9)            # [co, ci, kh, kw]
    conv1_b = b(ks[1], 8)
    conv2_w = w(ks[2], (16, 8, 3, 3), 72)
    conv2_b = b(ks[3], 16)
    oct_fc_w = w(ks[4], (16, 40), 16)              # stored transposed: [in, out]

    p = {}
    # OctExtractor, repacked for the banded-matmul kernel.
    p["conv1_band"] = jnp.asarray(_conv1_band(np.asarray(conv1_w)), conv_dtype)
    p["conv1_b"] = jnp.tile(conv1_b, (1, 16))                      # [1,128], lane = w*8+co
    p["conv2_band"] = jnp.asarray(_conv2_band(np.asarray(conv2_w)), conv_dtype)
    p["conv2_b"] = jnp.tile(conv2_b, (1, 8))                       # [1,128], lane = wo*16+co
    p["oct_pwo"] = jnp.tile(oct_fc_w, (8, 1)) / 64.0               # GAP(1/64) (x) Linear(16->40)
    p["oct_fc_b"] = b(ks[5], 40)
    # VfExtractor: Linear(54->64)+ReLU, Linear(64->40)+ReLU (weights stored [in, out]).
    p["vf_fc1_w"] = w(ks[6], (54, 64), 54)
    p["vf_fc1_b"] = b(ks[7], 64)
    p["vf_fc2_w"] = w(ks[8], (64, 40), 64)
    p["vf_fc2_b"] = b(ks[9], 40)
    # AttentionNet: alpha = sigmoid(Linear(80->40)([oct, vf])); weight pre-split.
    p["att_w_oct"] = w(ks[10], (40, 40), 80)
    p["att_w_vf"] = w(ks[11], (40, 40), 80)
    p["att_b"] = b(ks[12], 40)
    # FCNet(80): Linear(80->32)+ReLU (split over fusion halves), Linear(32->2) padded to
    # 128 output lanes so the only out_spec is lane-dense (wrapper slices [:, :2]).
    p["fc1_w_oct"] = w(ks[13], (40, 32), 80)
    p["fc1_w_vf"] = w(ks[14], (40, 32), 80)
    p["fc1_b"] = b(ks[15], 32)
    fc2 = w(jax.random.fold_in(key, 99), (32, 2), 32)
    fc2_b = 0.3 * jax.random.normal(jax.random.fold_in(key, 100), (1, 2), jnp.float32)
    p["fc2_w_pad"] = jnp.zeros((32, 128), jnp.float32).at[:, :2].set(fc2)
    p["fc2_b_pad"] = jnp.zeros((1, 128), jnp.float32).at[:, :2].set(fc2_b)
    p["_raw"] = {"conv1_w": conv1_w, "conv1_b": conv1_b,
                 "conv2_w": conv2_w, "conv2_b": conv2_b, "oct_fc_w": oct_fc_w}
    return p


# ------------------------------------------------------------------
# Pure-JAX reference of the (assumed) PyTorch module, for parity checking
# ------------------------------------------------------------------

def reference_forward(params, oct_in, vf_in):
    raw = params["_raw"]
    cdt = params["conv1_band"].dtype       # mimic the kernel's conv storage dtype
    f32 = jnp.float32
    hi = jax.lax.Precision.HIGHEST
    dn = ("NCHW", "OIHW", "NCHW")

    x = oct_in.astype(f32).astype(cdt).astype(f32)
    w1 = raw["conv1_w"].astype(cdt).astype(f32)
    w2 = raw["conv2_w"].astype(cdt).astype(f32)
    y1 = jax.lax.conv_general_dilated(x, w1, (1, 1), ((1, 1), (1, 1)),
                                      dimension_numbers=dn, precision=hi)
    a1 = jax.nn.relu(y1 + raw["conv1_b"].reshape(1, 8, 1, 1))
    a1 = a1.astype(cdt).astype(f32)
    y2 = jax.lax.conv_general_dilated(a1, w2, (2, 2), ((1, 1), (1, 1)),
                                      dimension_numbers=dn, precision=hi)
    a2 = jax.nn.relu(y2 + raw["conv2_b"].reshape(1, 16, 1, 1))
    g = jnp.mean(a2, axis=(2, 3))                                  # [B, 16]
    oct_fea = jax.nn.relu(g @ raw["oct_fc_w"] + params["oct_fc_b"])

    v = jax.nn.relu(vf_in @ params["vf_fc1_w"] + params["vf_fc1_b"])
    vf_fea = jax.nn.relu(v @ params["vf_fc2_w"] + params["vf_fc2_b"])

    att = oct_fea @ params["att_w_oct"] + vf_fea @ params["att_w_vf"] + params["att_b"]
    alpha = jax.nn.sigmoid(att)
    h = jax.nn.relu((alpha * oct_fea) @ params["fc1_w_oct"]
                    + ((1.0 - alpha) * vf_fea) @ params["fc1_w_vf"] + params["fc1_b"])
    return h @ params["fc2_w_pad"][:, :2] + params["fc2_b_pad"][:, :2]


if __name__ == "__main__":
    key = jax.random.PRNGKey(0)
    k1, k2 = jax.random.split(key, 2)
    oct_in = jax.random.normal(k1, (2, 1, 16, 16), jnp.float32)   # NCHW OCT image
    vf_in = jax.random.normal(k2, (2, 54), jnp.float32)           # 54-point visual field

    params = init_params(jax.random.PRNGKey(42))                  # bf16 conv path (default)
    out = jax.jit(vfoct_attention_forward)(params, oct_in, vf_in)
    jax.block_until_ready(out)
    assert out.shape == (2, 2) and out.dtype == jnp.float32

    # Parity check against the pure-JAX reference of the assumed module.
    ref = reference_forward(params, oct_in, vf_in)
    np.testing.assert_allclose(np.asarray(out), np.asarray(ref), atol=5e-2, rtol=5e-2)
    print("KERNEL_OK")
</pallas_src>

<mosaic_0001>
module attributes {stable_mosaic.version = 11 : i64} {
  func.func @_fused_forward_kernel(%arg0: i32, %arg1: memref<2x16x16xbf16, #tpu.memory_space<vmem>>, %arg2: memref<2x54xf32, #tpu.memory_space<vmem>>, %arg3: memref<16x384xbf16, #tpu.memory_space<vmem>>, %arg4: memref<1x128xf32, #tpu.memory_space<vmem>>, %arg5: memref<128x384xbf16, #tpu.memory_space<vmem>>, %arg6: memref<1x128xf32, #tpu.memory_space<vmem>>, %arg7: memref<128x40xf32, #tpu.memory_space<vmem>>, %arg8: memref<1x40xf32, #tpu.memory_space<vmem>>, %arg9: memref<54x64xf32, #tpu.memory_space<vmem>>, %arg10: memref<1x64xf32, #tpu.memory_space<vmem>>, %arg11: memref<64x40xf32, #tpu.memory_space<vmem>>, %arg12: memref<1x40xf32, #tpu.memory_space<vmem>>, %arg13: memref<40x40xf32, #tpu.memory_space<vmem>>, %arg14: memref<40x40xf32, #tpu.memory_space<vmem>>, %arg15: memref<1x40xf32, #tpu.memory_space<vmem>>, %arg16: memref<40x32xf32, #tpu.memory_space<vmem>>, %arg17: memref<40x32xf32, #tpu.memory_space<vmem>>, %arg18: memref<1x32xf32, #tpu.memory_space<vmem>>, %arg19: memref<32x128xf32, #tpu.memory_space<vmem>>, %arg20: memref<1x128xf32, #tpu.memory_space<vmem>>, %arg21: memref<2x128xf32, #tpu.memory_space<vmem>>) attributes {dimension_semantics = [#tpu.dimension_semantics<parallel>], iteration_bounds = array<i64: 1>, scalar_prefetch = 0 : i64, scratch_operands = 0 : i64, tpu.core_type = #tpu.core_type<tc>, window_params = [{transform_indices = @transform_0, window_bounds = array<i64: 2, 16, 16>}, {transform_indices = @transform_1, window_bounds = array<i64: 2, 54>}, {pipeline_mode = #tpu.pipeline_mode<synchronous>, transform_indices = @transform_2, window_bounds = array<i64: 16, 384>}, {pipeline_mode = #tpu.pipeline_mode<synchronous>, transform_indices = @transform_3, window_bounds = array<i64: 1, 128>}, {pipeline_mode = #tpu.pipeline_mode<synchronous>, transform_indices = @transform_4, window_bounds = array<i64: 128, 384>}, {pipeline_mode = #tpu.pipeline_mode<synchronous>, transform_indices = @transform_5, window_bounds = array<i64: 1, 128>}, {pipeline_mode = #tpu.pipeline_mode<synchronous>, transform_indices = @transform_6, window_bounds = array<i64: 128, 40>}, {pipeline_mode = #tpu.pipeline_mode<synchronous>, transform_indices = @transform_7, window_bounds = array<i64: 1, 40>}, {pipeline_mode = #tpu.pipeline_mode<synchronous>, transform_indices = @transform_8, window_bounds = array<i64: 54, 64>}, {pipeline_mode = #tpu.pipeline_mode<synchronous>, transform_indices = @transform_9, window_bounds = array<i64: 1, 64>}, {pipeline_mode = #tpu.pipeline_mode<synchronous>, transform_indices = @transform_10, window_bounds = array<i64: 64, 40>}, {pipeline_mode = #tpu.pipeline_mode<synchronous>, transform_indices = @transform_11, window_bounds = array<i64: 1, 40>}, {pipeline_mode = #tpu.pipeline_mode<synchronous>, transform_indices = @transform_12, window_bounds = array<i64: 40, 40>}, {pipeline_mode = #tpu.pipeline_mode<synchronous>, transform_indices = @transform_13, window_bounds = array<i64: 40, 40>}, {pipeline_mode = #tpu.pipeline_mode<synchronous>, transform_indices = @transform_14, window_bounds = array<i64: 1, 40>}, {pipeline_mode = #tpu.pipeline_mode<synchronous>, transform_indices = @transform_15, window_bounds = array<i64: 40, 32>}, {pipeline_mode = #tpu.pipeline_mode<synchronous>, transform_indices = @transform_16, window_bounds = array<i64: 40, 32>}, {pipeline_mode = #tpu.pipeline_mode<synchronous>, transform_indices = @transform_17, window_bounds = array<i64: 1, 32>}, {pipeline_mode = #tpu.pipeline_mode<synchronous>, transform_indices = @transform_18, window_bounds = array<i64: 32, 128>}, {pipeline_mode = #tpu.pipeline_mode<synchronous>, transform_indices = @transform_19, window_bounds = array<i64: 1, 128>}, {transform_indices = @transform_20, window_bounds = array<i64: 2, 128>}]} {
    %c0 = arith.constant 0 : index
    %c0_0 = arith.constant 0 : index
    %c0_1 = arith.constant 0 : index
    %0 = vector.load %arg1[%c0, %c0_0, %c0_1] : memref<2x16x16xbf16, #tpu.memory_space<vmem>>, vector<2x16x16xbf16>
    %1 = vector.shape_cast %0 : vector<2x16x16xbf16> to vector<32x16xbf16>
    %c0_2 = arith.constant 0 : index
    %c0_3 = arith.constant 0 : index
    %2 = vector.load %arg3[%c0_2, %c0_3] : memref<16x384xbf16, #tpu.memory_space<vmem>>, vector<16x384xbf16>
    %cst = arith.constant dense<0.000000e+00> : vector<32x384xf32>
    %3 = tpu.matmul %1, %2, %cst {dimension_numbers = #tpu.dot_dimension_numbers<[1], [0], [0], [1], [0, 0, 1, 1], [], []>} : vector<32x16xbf16>, vector<16x384xbf16>, vector<32x384xf32> -> vector<32x384xf32>
    %4 = vector.extract_strided_slice %3 {offsets = [0, 0], sizes = [32, 128], strides = [1, 1]} : vector<32x384xf32> to vector<32x128xf32>
    %5 = vector.shape_cast %4 : vector<32x128xf32> to vector<2x16x128xf32>
    %6 = vector.extract_strided_slice %3 {offsets = [0, 128], sizes = [32, 128], strides = [1, 1]} : vector<32x384xf32> to vector<32x128xf32>
    %7 = vector.shape_cast %6 : vector<32x128xf32> to vector<2x16x128xf32>
    %8 = vector.extract_strided_slice %3 {offsets = [0, 256], sizes = [32, 128], strides = [1, 1]} : vector<32x384xf32> to vector<32x128xf32>
    %9 = vector.shape_cast %8 : vector<32x128xf32> to vector<2x16x128xf32>
    %cst_4 = arith.constant 0.000000e+00 : f32
    %10 = vector.broadcast %cst_4 : f32 to vector<2x1x128xf32>
    %11 = vector.extract_strided_slice %5 {offsets = [0, 0, 0], sizes = [2, 15, 128], strides = [1, 1, 1]} : vector<2x16x128xf32> to vector<2x15x128xf32>
    %12 = tpu.concatenate %10, %11 in 1 : vector<2x1x128xf32>, vector<2x15x128xf32> -> vector<2x16x128xf32>
    %13 = vector.extract_strided_slice %9 {offsets = [0, 1, 0], sizes = [2, 15, 128], strides = [1, 1, 1]} : vector<2x16x128xf32> to vector<2x15x128xf32>
    %14 = tpu.concatenate %13, %10 in 1 : vector<2x15x128xf32>, vector<2x1x128xf32> -> vector<2x16x128xf32>
    %15 = arith.addf %7, %12 : vector<2x16x128xf32>
    %16 = arith.addf %15, %14 : vector<2x16x128xf32>
    %c0_5 = arith.constant 0 : index
    %c0_6 = arith.constant 0 : index
    %17 = vector.load %arg4[%c0_5, %c0_6] : memref<1x128xf32, #tpu.memory_space<vmem>>, vector<1x128xf32>
    %18 = vector.shape_cast %17 : vector<1x128xf32> to vector<1x1x128xf32>
    %19 = vector.broadcast %18 : vector<1x1x128xf32> to vector<2x16x128xf32>
    %20 = arith.addf %16, %19 : vector<2x16x128xf32>
    %cst_7 = arith.constant 0.000000e+00 : f32
    %21 = vector.broadcast %cst_7 : f32 to vector<2x16x128xf32>
    %22 = arith.maximumf %20, %21 : vector<2x16x128xf32>
    %23 = arith.truncf %22 : vector<2x16x128xf32> to vector<2x16x128xbf16>
    %24 = vector.shape_cast %23 : vector<2x16x128xbf16> to vector<32x128xbf16>
    %c0_8 = arith.constant 0 : index
    %c0_9 = arith.constant 0 : index
    %25 = vector.load %arg5[%c0_8, %c0_9] : memref<128x384xbf16, #tpu.memory_space<vmem>>, vector<128x384xbf16>
    %cst_10 = arith.constant dense<0.000000e+00> : vector<32x384xf32>
    %26 = tpu.matmul %24, %25, %cst_10 {dimension_numbers = #tpu.dot_dimension_numbers<[1], [0], [0], [1], [0, 0, 1, 1], [], []>} : vector<32x128xbf16>, vector<128x384xbf16>, vector<32x384xf32> -> vector<32x384xf32>
    %27 = vector.extract_strided_slice %26 {offsets = [0, 0], sizes = [32, 128], strides = [1, 1]} : vector<32x384xf32> to vector<32x128xf32>
    %28 = vector.shape_cast %27 : vector<32x128xf32> to vector<2x16x128xf32>
    %29 = vector.extract_strided_slice %26 {offsets = [0, 128], sizes = [32, 128], strides = [1, 1]} : vector<32x384xf32> to vector<32x128xf32>
    %30 = vector.shape_cast %29 : vector<32x128xf32> to vector<2x16x128xf32>
    %31 = vector.extract_strided_slice %26 {offsets = [0, 256], sizes = [32, 128], strides = [1, 1]} : vector<32x384xf32> to vector<32x128xf32>
    %32 = vector.shape_cast %31 : vector<32x128xf32> to vector<2x16x128xf32>
    %cst_11 = arith.constant 0.000000e+00 : f32
    %33 = vector.broadcast %cst_11 : f32 to vector<2x1x128xf32>
    %34 = vector.extract_strided_slice %28 {offsets = [0, 0, 0], sizes = [2, 15, 128], strides = [1, 1, 1]} : vector<2x16x128xf32> to vector<2x15x128xf32>
    %35 = tpu.concatenate %33, %34 in 1 : vector<2x1x128xf32>, vector<2x15x128xf32> -> vector<2x16x128xf32>
    %36 = vector.extract_strided_slice %32 {offsets = [0, 1, 0], sizes = [2, 15, 128], strides = [1, 1, 1]} : vector<2x16x128xf32> to vector<2x15x128xf32>
    %37 = tpu.concatenate %36, %33 in 1 : vector<2x15x128xf32>, vector<2x1x128xf32> -> vector<2x16x128xf32>
    %38 = arith.addf %30, %35 : vector<2x16x128xf32>
    %39 = arith.addf %38, %37 : vector<2x16x128xf32>
    %c0_12 = arith.constant 0 : index
    %c0_13 = arith.constant 0 : index
    %40 = vector.load %arg6[%c0_12, %c0_13] : memref<1x128xf32, #tpu.memory_space<vmem>>, vector<1x128xf32>
    %41 = vector.shape_cast %40 : vector<1x128xf32> to vector<1x1x128xf32>
    %42 = vector.broadcast %41 : vector<1x1x128xf32> to vector<2x16x128xf32>
    %43 = arith.addf %39, %42 : vector<2x16x128xf32>
    %cst_14 = arith.constant 0.000000e+00 : f32
    %44 = vector.broadcast %cst_14 : f32 to vector<2x16x128xf32>
    %45 = arith.maximumf %43, %44 : vector<2x16x128xf32>
    %46 = tpu.iota {dimensions = array<i32: 0>} : vector<16x128xi32>
    %c2_i32 = arith.constant 2 : i32
    %c0_i32 = arith.constant 0 : i32
    %47 = arith.cmpi eq, %c2_i32, %c0_i32 : i32
    %c1_i32 = arith.constant 1 : i32
    %48 = arith.select %47, %c1_i32, %c2_i32 : i32
    %49 = vector.broadcast %48 : i32 to vector<16x128xi32>
    %50 = arith.remsi %46, %49 : vector<16x128xi32>
    %c0_i32_15 = arith.constant 0 : i32
    %51 = vector.broadcast %c0_i32_15 : i32 to vector<16x128xi32>
    %52 = arith.cmpi ne, %50, %51 : vector<16x128xi32>
    %c0_i32_16 = arith.constant 0 : i32
    %53 = vector.broadcast %c0_i32_16 : i32 to vector<16x128xi32>
    %54 = arith.cmpi slt, %50, %53 : vector<16x128xi32>
    %c0_i32_17 = arith.constant 0 : i32
    %55 = arith.cmpi slt, %48, %c0_i32_17 : i32
    %56 = vector.broadcast %55 : i1 to vector<16x128xi1>
    %57 = vector.broadcast %56 : vector<16x128xi1> to vector<16x128xi1>
    %58 = arith.xori %54, %57 : vector<16x128xi1>
    %59 = arith.andi %58, %52 : vector<16x128xi1>
    %60 = vector.broadcast %48 : i32 to vector<16x128xi32>
    %61 = arith.addi %50, %60 : vector<16x128xi32>
    %62 = arith.select %59, %61, %50 : vector<16x128xi1>, vector<16x128xi32>
    %c0_i32_18 = arith.constant 0 : i32
    %63 = vector.broadcast %c0_i32_18 : i32 to vector<16x128xi32>
    %64 = arith.cmpi eq, %62, %63 : vector<16x128xi32>
    %65 = arith.extui %64 : vector<16x128xi1> to vector<16x128xi32>
    %66 = arith.sitofp %65 : vector<16x128xi32> to vector<16x128xf32>
    %67 = vector.shape_cast %66 : vector<16x128xf32> to vector<1x16x128xf32>
    %68 = vector.broadcast %67 : vector<1x16x128xf32> to vector<2x16x128xf32>
    %69 = arith.mulf %45, %68 : vector<2x16x128xf32>
    %cst_19 = arith.constant dense<0.000000e+00> : vector<2x128xf32>
    %70 = vector.multi_reduction <add>, %69, %cst_19 [1] : vector<2x16x128xf32> to vector<2x128xf32>
    %c0_20 = arith.constant 0 : index
    %c0_21 = arith.constant 0 : index
    %71 = vector.load %arg7[%c0_20, %c0_21] : memref<128x40xf32, #tpu.memory_space<vmem>>, vector<128x40xf32>
    %cst_22 = arith.constant dense<0.000000e+00> : vector<2x40xf32>
    %72 = tpu.matmul %70, %71, %cst_22 {dimension_numbers = #tpu.dot_dimension_numbers<[1], [0], [0], [1], [0, 0, 1, 1], [], []>} : vector<2x128xf32>, vector<128x40xf32>, vector<2x40xf32> -> vector<2x40xf32>
    %c0_23 = arith.constant 0 : index
    %c0_24 = arith.constant 0 : index
    %73 = vector.load %arg8[%c0_23, %c0_24] : memref<1x40xf32, #tpu.memory_space<vmem>>, vector<1x40xf32>
    %74 = vector.broadcast %73 : vector<1x40xf32> to vector<2x40xf32>
    %75 = arith.addf %72, %74 : vector<2x40xf32>
    %cst_25 = arith.constant 0.000000e+00 : f32
    %76 = vector.broadcast %cst_25 : f32 to vector<2x40xf32>
    %77 = arith.maximumf %75, %76 : vector<2x40xf32>
    %c0_26 = arith.constant 0 : index
    %c0_27 = arith.constant 0 : index
    %78 = vector.load %arg2[%c0_26, %c0_27] : memref<2x54xf32, #tpu.memory_space<vmem>>, vector<2x54xf32>
    %c0_28 = arith.constant 0 : index
    %c0_29 = arith.constant 0 : index
    %79 = vector.load %arg9[%c0_28, %c0_29] : memref<54x64xf32, #tpu.memory_space<vmem>>, vector<54x64xf32>
    %cst_30 = arith.constant dense<0.000000e+00> : vector<2x64xf32>
    %80 = tpu.matmul %78, %79, %cst_30 {dimension_numbers = #tpu.dot_dimension_numbers<[1], [0], [0], [1], [0, 0, 1, 1], [], []>} : vector<2x54xf32>, vector<54x64xf32>, vector<2x64xf32> -> vector<2x64xf32>
    %c0_31 = arith.constant 0 : index
    %c0_32 = arith.constant 0 : index
    %81 = vector.load %arg10[%c0_31, %c0_32] : memref<1x64xf32, #tpu.memory_space<vmem>>, vector<1x64xf32>
    %82 = vector.broadcast %81 : vector<1x64xf32> to vector<2x64xf32>
    %83 = arith.addf %80, %82 : vector<2x64xf32>
    %cst_33 = arith.constant 0.000000e+00 : f32
    %84 = vector.broadcast %cst_33 : f32 to vector<2x64xf32>
    %85 = arith.maximumf %83, %84 : vector<2x64xf32>
    %c0_34 = arith.constant 0 : index
    %c0_35 = arith.constant 0 : index
    %86 = vector.load %arg11[%c0_34, %c0_35] : memref<64x40xf32, #tpu.memory_space<vmem>>, vector<64x40xf32>
    %cst_36 = arith.constant dense<0.000000e+00> : vector<2x40xf32>
    %87 = tpu.matmul %85, %86, %cst_36 {dimension_numbers = #tpu.dot_dimension_numbers<[1], [0], [0], [1], [0, 0, 1, 1], [], []>} : vector<2x64xf32>, vector<64x40xf32>, vector<2x40xf32> -> vector<2x40xf32>
    %c0_37 = arith.constant 0 : index
    %c0_38 = arith.constant 0 : index
    %88 = vector.load %arg12[%c0_37, %c0_38] : memref<1x40xf32, #tpu.memory_space<vmem>>, vector<1x40xf32>
    %89 = vector.broadcast %88 : vector<1x40xf32> to vector<2x40xf32>
    %90 = arith.addf %87, %89 : vector<2x40xf32>
    %cst_39 = arith.constant 0.000000e+00 : f32
    %91 = vector.broadcast %cst_39 : f32 to vector<2x40xf32>
    %92 = arith.maximumf %90, %91 : vector<2x40xf32>
    %c0_40 = arith.constant 0 : index
    %c0_41 = arith.constant 0 : index
    %93 = vector.load %arg13[%c0_40, %c0_41] : memref<40x40xf32, #tpu.memory_space<vmem>>, vector<40x40xf32>
    %cst_42 = arith.constant dense<0.000000e+00> : vector<2x40xf32>
    %94 = tpu.matmul %77, %93, %cst_42 {dimension_numbers = #tpu.dot_dimension_numbers<[1], [0], [0], [1], [0, 0, 1, 1], [], []>} : vector<2x40xf32>, vector<40x40xf32>, vector<2x40xf32> -> vector<2x40xf32>
    %c0_43 = arith.constant 0 : index
    %c0_44 = arith.constant 0 : index
    %95 = vector.load %arg14[%c0_43, %c0_44] : memref<40x40xf32, #tpu.memory_space<vmem>>, vector<40x40xf32>
    %cst_45 = arith.constant dense<0.000000e+00> : vector<2x40xf32>
    %96 = tpu.matmul %92, %95, %cst_45 {dimension_numbers = #tpu.dot_dimension_numbers<[1], [0], [0], [1], [0, 0, 1, 1], [], []>} : vector<2x40xf32>, vector<40x40xf32>, vector<2x40xf32> -> vector<2x40xf32>
    %97 = arith.addf %94, %96 : vector<2x40xf32>
    %c0_46 = arith.constant 0 : index
    %c0_47 = arith.constant 0 : index
    %98 = vector.load %arg15[%c0_46, %c0_47] : memref<1x40xf32, #tpu.memory_space<vmem>>, vector<1x40xf32>
    %99 = vector.broadcast %98 : vector<1x40xf32> to vector<2x40xf32>
    %100 = arith.addf %97, %99 : vector<2x40xf32>
    %101 = arith.negf %100 : vector<2x40xf32>
    %102 = math.exp %101 : vector<2x40xf32>
    %cst_48 = arith.constant 1.000000e+00 : f32
    %103 = vector.broadcast %cst_48 : f32 to vector<2x40xf32>
    %104 = arith.addf %103, %102 : vector<2x40xf32>
    %105 = arith.divf %103, %104 : vector<2x40xf32>
    %106 = arith.mulf %105, %77 : vector<2x40xf32>
    %cst_49 = arith.constant 1.000000e+00 : f32
    %107 = vector.broadcast %cst_49 : f32 to vector<2x40xf32>
    %108 = arith.subf %107, %105 : vector<2x40xf32>
    %109 = arith.mulf %108, %92 : vector<2x40xf32>
    %c0_50 = arith.constant 0 : index
    %c0_51 = arith.constant 0 : index
    %110 = vector.load %arg16[%c0_50, %c0_51] : memref<40x32xf32, #tpu.memory_space<vmem>>, vector<40x32xf32>
    %cst_52 = arith.constant dense<0.000000e+00> : vector<2x32xf32>
    %111 = tpu.matmul %106, %110, %cst_52 {dimension_numbers = #tpu.dot_dimension_numbers<[1], [0], [0], [1], [0, 0, 1, 1], [], []>} : vector<2x40xf32>, vector<40x32xf32>, vector<2x32xf32> -> vector<2x32xf32>
    %c0_53 = arith.constant 0 : index
    %c0_54 = arith.constant 0 : index
    %112 = vector.load %arg17[%c0_53, %c0_54] : memref<40x32xf32, #tpu.memory_space<vmem>>, vector<40x32xf32>
    %cst_55 = arith.constant dense<0.000000e+00> : vector<2x32xf32>
    %113 = tpu.matmul %109, %112, %cst_55 {dimension_numbers = #tpu.dot_dimension_numbers<[1], [0], [0], [1], [0, 0, 1, 1], [], []>} : vector<2x40xf32>, vector<40x32xf32>, vector<2x32xf32> -> vector<2x32xf32>
    %114 = arith.addf %111, %113 : vector<2x32xf32>
    %c0_56 = arith.constant 0 : index
    %c0_57 = arith.constant 0 : index
    %115 = vector.load %arg18[%c0_56, %c0_57] : memref<1x32xf32, #tpu.memory_space<vmem>>, vector<1x32xf32>
    %116 = vector.broadcast %115 : vector<1x32xf32> to vector<2x32xf32>
    %117 = arith.addf %114, %116 : vector<2x32xf32>
    %cst_58 = arith.constant 0.000000e+00 : f32
    %118 = vector.broadcast %cst_58 : f32 to vector<2x32xf32>
    %119 = arith.maximumf %117, %118 : vector<2x32xf32>
    %c0_59 = arith.constant 0 : index
    %c0_60 = arith.constant 0 : index
    %120 = vector.load %arg19[%c0_59, %c0_60] : memref<32x128xf32, #tpu.memory_space<vmem>>, vector<32x128xf32>
    %cst_61 = arith.constant dense<0.000000e+00> : vector<2x128xf32>
    %121 = tpu.matmul %119, %120, %cst_61 {dimension_numbers = #tpu.dot_dimension_numbers<[1], [0], [0], [1], [0, 0, 1, 1], [], []>} : vector<2x32xf32>, vector<32x128xf32>, vector<2x128xf32> -> vector<2x128xf32>
    %c0_62 = arith.constant 0 : index
    %c0_63 = arith.constant 0 : index
    %122 = vector.load %arg20[%c0_62, %c0_63] : memref<1x128xf32, #tpu.memory_space<vmem>>, vector<1x128xf32>
    %123 = vector.broadcast %122 : vector<1x128xf32> to vector<2x128xf32>
    %124 = arith.addf %121, %123 : vector<2x128xf32>
    %c0_64 = arith.constant 0 : index
    %c0_65 = arith.constant 0 : index
    %125 = vector.load %arg21[%c0_64, %c0_65] : memref<2x128xf32, #tpu.memory_space<vmem>>, vector<2x128xf32>
    tpu.vector_store %arg21[%c0_64, %c0_65], %124 {strides = array<i32>} : memref<2x128xf32, #tpu.memory_space<vmem>>, vector<2x128xf32>,
    return
  }
  func.func @transform_0(%arg0: i32) -> (i32, i32, i32) {
    %c0_i32 = arith.constant 0 : i32
    %c0_i32_0 = arith.constant 0 : i32
    %c0_i32_1 = arith.constant 0 : i32
    return %arg0, %c0_i32, %c0_i32_0 : i32, i32, i32
  }
  func.func @transform_1(%arg0: i32) -> (i32, i32) {
    %c0_i32 = arith.constant 0 : i32
    %c0_i32_0 = arith.constant 0 : i32
    return %arg0, %c0_i32 : i32, i32
  }
  func.func @transform_2(%arg0: i32) -> (i32, i32) {
    %c0_i32 = arith.constant 0 : i32
    %c0_i32_0 = arith.constant 0 : i32
    %c0_i32_1 = arith.constant 0 : i32
    return %c0_i32, %c0_i32_0 : i32, i32
  }
  func.func @transform_3(%arg0: i32) -> (i32, i32) {
    %c0_i32 = arith.constant 0 : i32
    %c0_i32_0 = arith.constant 0 : i32
    %c0_i32_1 = arith.constant 0 : i32
    return %c0_i32, %c0_i32_0 : i32, i32
  }
  func.func @transform_4(%arg0: i32) -> (i32, i32) {
    %c0_i32 = arith.constant 0 : i32
    %c0_i32_0 = arith.constant 0 : i32
    %c0_i32_1 = arith.constant 0 : i32
    return %c0_i32, %c0_i32_0 : i32, i32
  }
  func.func @transform_5(%arg0: i32) -> (i32, i32) {
    %c0_i32 = arith.constant 0 : i32
    %c0_i32_0 = arith.constant 0 : i32
    %c0_i32_1 = arith.constant 0 : i32
    return %c0_i32, %c0_i32_0 : i32, i32
  }
  func.func @transform_6(%arg0: i32) -> (i32, i32) {
    %c0_i32 = arith.constant 0 : i32
    %c0_i32_0 = arith.constant 0 : i32
    %c0_i32_1 = arith.constant 0 : i32
    return %c0_i32, %c0_i32_0 : i32, i32
  }
  func.func @transform_7(%arg0: i32) -> (i32, i32) {
    %c0_i32 = arith.constant 0 : i32
    %c0_i32_0 = arith.constant 0 : i32
    %c0_i32_1 = arith.constant 0 : i32
    return %c0_i32, %c0_i32_0 : i32, i32
  }
  func.func @transform_8(%arg0: i32) -> (i32, i32) {
    %c0_i32 = arith.constant 0 : i32
    %c0_i32_0 = arith.constant 0 : i32
    %c0_i32_1 = arith.constant 0 : i32
    return %c0_i32, %c0_i32_0 : i32, i32
  }
  func.func @transform_9(%arg0: i32) -> (i32, i32) {
    %c0_i32 = arith.constant 0 : i32
    %c0_i32_0 = arith.constant 0 : i32
    %c0_i32_1 = arith.constant 0 : i32
    return %c0_i32, %c0_i32_0 : i32, i32
  }
  func.func @transform_10(%arg0: i32) -> (i32, i32) {
    %c0_i32 = arith.constant 0 : i32
    %c0_i32_0 = arith.constant 0 : i32
    %c0_i32_1 = arith.constant 0 : i32
    return %c0_i32, %c0_i32_0 : i32, i32
  }
  func.func @transform_11(%arg0: i32) -> (i32, i32) {
    %c0_i32 = arith.constant 0 : i32
    %c0_i32_0 = arith.constant 0 : i32
    %c0_i32_1 = arith.constant 0 : i32
    return %c0_i32, %c0_i32_0 : i32, i32
  }
  func.func @transform_12(%arg0: i32) -> (i32, i32) {
    %c0_i32 = arith.constant 0 : i32
    %c0_i32_0 = arith.constant 0 : i32
    %c0_i32_1 = arith.constant 0 : i32
    return %c0_i32, %c0_i32_0 : i32, i32
  }
  func.func @transform_13(%arg0: i32) -> (i32, i32) {
    %c0_i32 = arith.constant 0 : i32
    %c0_i32_0 = arith.constant 0 : i32
    %c0_i32_1 = arith.constant 0 : i32
    return %c0_i32, %c0_i32_0 : i32, i32
  }
  func.func @transform_14(%arg0: i32) -> (i32, i32) {
    %c0_i32 = arith.constant 0 : i32
    %c0_i32_0 = arith.constant 0 : i32
    %c0_i32_1 = arith.constant 0 : i32
    return %c0_i32, %c0_i32_0 : i32, i32
  }
  func.func @transform_15(%arg0: i32) -> (i32, i32) {
    %c0_i32 = arith.constant 0 : i32
    %c0_i32_0 = arith.constant 0 : i32
    %c0_i32_1 = arith.constant 0 : i32
    return %c0_i32, %c0_i32_0 : i32, i32
  }
  func.func @transform_16(%arg0: i32) -> (i32, i32) {
    %c0_i32 = arith.constant 0 : i32
    %c0_i32_0 = arith.constant 0 : i32
    %c0_i32_1 = arith.constant 0 : i32
    return %c0_i32, %c0_i32_0 : i32, i32
  }
  func.func @transform_17(%arg0: i32) -> (i32, i32) {
    %c0_i32 = arith.constant 0 : i32
    %c0_i32_0 = arith.constant 0 : i32
    %c0_i32_1 = arith.constant 0 : i32
    return %c0_i32, %c0_i32_0 : i32, i32
  }
  func.func @transform_18(%arg0: i32) -> (i32, i32) {
    %c0_i32 = arith.constant 0 : i32
    %c0_i32_0 = arith.constant 0 : i32
    %c0_i32_1 = arith.constant 0 : i32
    return %c0_i32, %c0_i32_0 : i32, i32
  }
  func.func @transform_19(%arg0: i32) -> (i32, i32) {
    %c0_i32 = arith.constant 0 : i32
    %c0_i32_0 = arith.constant 0 : i32
    %c0_i32_1 = arith.constant 0 : i32
    return %c0_i32, %c0_i32_0 : i32, i32
  }
  func.func @transform_20(%arg0: i32) -> (i32, i32) {
    %c0_i32 = arith.constant 0 : i32
    %c0_i32_0 = arith.constant 0 : i32
    return %arg0, %c0_i32 : i32, i32
  }
}

</mosaic_0001>

<bundles_post_ra>
// kernel: vfoct_attention_forward.1
= control target key start
LH: loop header
LB: loop body
LE: loop exit
PB: predicated region body
PF: predicated region fallthrough
CT: control target
= control target key end

     0   :  { %s2366_s0 = inlined_call_operand.vmem [shape: bf16[2,16,16], index: 0, kind: input, shape index: {}]   ;;  %s2367_s1 = inlined_call_operand.vmem [shape: f32[2,54], index: 1, kind: input, shape index: {}]   ;;  %s2368_s2 = inlined_call_operand.hbm [shape: bf16[16,384], index: 2, kind: input, shape index: {}]   ;;  %s2369_s3 = inlined_call_operand.vmem [shape: f32[1,128], index: 3, kind: input, shape index: {}]   ;;  %s2370_s4 = inlined_call_operand.vmem [shape: bf16[128,384], index: 4, kind: input, shape index: {}]   ;;  %s2371_s5 = inlined_call_operand.vmem [shape: f32[1,128], index: 5, kind: input, shape index: {}]   ;;  %s2372_s6 = inlined_call_operand.vmem [shape: f32[128,40], index: 6, kind: input, shape index: {}]   ;;  %s2373_s7 = inlined_call_operand.vmem [shape: f32[1,40], index: 7, kind: input, shape index: {}]   ;;  %s2374_s8 = inlined_call_operand.vmem [shape: f32[54,64], index: 8, kind: input, shape index: {}]   ;;  %s2375_s9 = inlined_call_operand.vmem [shape: f32[1,64], index: 9, kind: input, shape index: {}]   ;;  %s2376_s10 = inlined_call_operand.vmem [shape: f32[64,40], index: 10, kind: input, shape index: {}]   ;;  %s2377_s11 = inlined_call_operand.vmem [shape: f32[1,40], index: 11, kind: input, shape index: {}]   ;;  %s2378_s12 = inlined_call_operand.vmem [shape: f32[40,40], index: 12, kind: input, shape index: {}]   ;;  %s2379_s13 = inlined_call_operand.vmem [shape: f32[40,40], index: 13, kind: input, shape index: {}]   ;;  %s2380_s14 = inlined_call_operand.hbm [shape: f32[1,40], index: 14, kind: input, shape index: {}]   ;;  %s2381_s15 = inlined_call_operand.vmem [shape: f32[40,32], index: 15, kind: input, shape index: {}]   ;;  %s2382_s16 = inlined_call_operand.vmem [shape: f32[40,32], index: 16, kind: input, shape index: {}]   ;;  %s2383_s17 = inlined_call_operand.vmem [shape: f32[1,32], index: 17, kind: input, shape index: {}]   ;;  %s2384_s18 = inlined_call_operand.vmem [shape: f32[32,128], index: 18, kind: input, shape index: {}]   ;;  %s2385_s19 = inlined_call_operand.vmem [shape: f32[1,128], index: 19, kind: input, shape index: {}]   ;;  %s2386_s20 = inlined_call_operand.hbm [shape: f32[2,128], index: 20, kind: output, shape index: {}]  }
   0x1   :  { %2391 = sst [smem:[#allocation11_spill]] %s2366_s0 }
   0x2   :  { %2392 = sst [smem:[#allocation12_spill]] %s2367_s1 }
   0x3   :  { %2393 = sst [smem:[#allocation13_spill]] %s2368_s2 }
   0x4   :  { %2394 = sst [smem:[#allocation14_spill]] %s2369_s3 }
   0x5   :  { %2395 = sst [smem:[#allocation15_spill]] %s2370_s4 }
   0x6   :  { %2396 = sst [smem:[#allocation16_spill]] %s2386_s20 }
   0x7   :  { %25 = vsyncpa [#allocation3], 0 }
   0x8   :  { %26 = vsyncpa [#allocation6], 0 }
   0x9   :  { %27 = vsyncpa [#allocation4], 0  ;;  %s1873_s1 = smov [#allocation2]   ;;  %s2397_s2 = sld [smem:[#allocation13_spill]] }
   0xa   :  { %s37_s22 = sshll.u32 %s1873_s1, 4  ;;  %s38_s22 = int_to_ptr.vmem [resolvable:$true] %s37_s22 }
   0xf   :  { %s1801_s25 = scalar_lea.hbm %s2397_s2, 384 }
  0x10   :  { %p1802_p0 = scmp.ne.s32.totalorder %s2397_s2, %s1801_s25  ;;  %p1805_p1 = scmp.lt.u32.totalorder %s1801_s25, %s2397_s2 }
  0x12   :  { %p1807_p2 = pnand %p1805_p1, %p1802_p0 }
  0x14   :  { %1810 = shalt.err (!%p1807_p2)
}
  0x15   :  { %s1811_s4 = scalar_lea.vmem %s38_s22, 384  ;;  %p1816_p4 = scmp.lt.s32.totalorder %s38_s22, %s38_s22 }
  0x16   :  { %p1812_p3 = scmp.ne.s32.totalorder %s38_s22, %s1811_s4  ;;  %p1817_p5 = scmp.lt.s32.totalorder %s1811_s4, %s1811_s4 }
  0x18   :  { %p1818_p6 = por %p1817_p5, %p1816_p4 }
  0x1a   :  { %p1819_p7 = pnand %p1818_p6, %p1812_p3 }
  0x1c   :  { %1822 = shalt.err (!%p1819_p7)
}
  0x1d   :  { %s1874_s29 = smov 192   ;;  %s1875_s30 = smov 12  }
  0x1e   :  { %43 = dma.hbm_to_vmem [thread:$0]  %s2397_s2, 384, %s38_s22, [#allocation3], %s1874_s29, %s1874_s29, %s1875_s30  }
  0x1f   :  { %s1876_s1 = smov [#allocation5]   ;;  %s1823_s3 = scalar_lea.hbm %s2380_s14, 16 }
  0x20   :  { %s72_s23 = sshll.u32 %s1876_s1, 4  ;;  %p1824_p8 = scmp.ne.s32.totalorder %s2380_s14, %s1823_s3  ;;  %s73_s23 = int_to_ptr.vmem [resolvable:$true] %s72_s23 }
  0x21   :  { %p1827_p9 = scmp.lt.u32.totalorder %s1823_s3, %s2380_s14 }
  0x23   :  { %p1829_p10 = pnand %p1827_p9, %p1824_p8 }
  0x25   :  { %1832 = shalt.err (!%p1829_p10)
}
  0x26   :  { %s1833_s20 = scalar_lea.vmem %s73_s23, 16  ;;  %s1837_s22 = scalar_lea.vmem %s73_s23, 32 }
  0x27   :  { %p1834_p11 = scmp.ne.s32.totalorder %s73_s23, %s1833_s20  ;;  %p1838_p12 = scmp.lt.s32.totalorder %s73_s23, %s73_s23 }
  0x28   :  { %p1839_p13 = scmp.lt.s32.totalorder %s1837_s22, %s1833_s20 }
  0x2a   :  { %p1840_p0 = por %p1839_p13, %p1838_p12 }
  0x2c   :  { %p1841_p1 = pnand %p1840_p0, %p1834_p11 }
  0x2e   :  { %1844 = shalt.err (!%p1841_p1)
}
  0x2f   :  { %75 = dma.hbm_to_vmem [thread:$0]  %s2380_s14, 16, %s73_s23, [#allocation6]  }
  0x30   :  { %1867 = dma.done.wait [#allocation3], 384  }
  0x31   :  { %1868 = vsyncadd [#allocation3], 4294966912 }
  0x32   :  { %1869 = dma.done.wait [#allocation6], 16  }
  0x33   :  { %1870 = vsyncadd [#allocation6], 4294967280  ;;  %v1877_v0 = vmov 0   ;;  %v1759_v1 = vld [vmem:[#allocation2 + $0x4] ss:$12 sps:$4 sm:$0xff]   ;;  %vm127_vm0 = vcmask 130048  }
  0x34   :  { %166 = vmatprep.mubr.bf16.mxu0 %v1877_v0  ;;  %v1761_v2 = vld [vmem:[#allocation2 + $0x8] ss:$12 sps:$4 sm:$0xff]   ;;  %134 = vmatprep.subr.bf16.mxu0 %v1759_v1  ;;  %v1762_v3 = vld [vmem:[#allocation2] ss:$12 sps:$4 sm:$0xff]   ;;  %s2398_s0 = sld [smem:[#allocation11_spill]]  ;;  %s2399_s24 = sld [smem:[#allocation15_spill]] }
  0x35   :  { %1515 = vmatprep.subr.bf16.mxu1 %v1761_v2  ;;  %135 = vmatpush1.bf16.msra.mxu0 %v1762_v3  ;;  %v1878_v30 = vmov 0.0|0.0   ;;  %vm240_vm1 = vcmask 1040384   ;;  %vm257_vm2 = vcmask 1046528   ;;  %s2400_s23 = sld [smem:[#allocation14_spill]]  ;;  %vm1879_vm3 = vmmov 0  }
  0x36   :  { %1516 = vmatpush3.bf16.msra.mxu1 %v1761_v2  ;;  %vm781_vm4 = vcmask 1045504   ;;  %vm777_vm5 = vcmask 441344   ;;  %vm871_vm8 = vcmask 523264   ;;  %vm688_vm9 = vcmask 1041409  }
  0x37   :  { %vm956_vm10 = vcmask 326656   ;;  %vm1296_vm11 = vcmask 261120  }
  0x3a   :  { %v1763_v4 = vld [vmem:[%s2398_s0] sm:$0xff]   ;;  %v1764_v5 = vld [vmem:[%s2398_s0 + $0x8] sm:$0xff]   ;;  %v1771_v12 = vld [vmem:[%s2399_s24 + $0x30] ss:$12 sps:$4 sm:$0xff]  }
  0x3b   :  { %1517 = vmatprep.mubr.msk.bf16.mxu1 %vm127_vm0, %v1763_v4  ;;  %v1765_v6 = vld [vmem:[%s2399_s24] ss:$12 sps:$4 sm:$0xff]   ;;  %v1767_v7 = vld [vmem:[%s2399_s24 + $0x4] ss:$12 sps:$4 sm:$0xff]   ;;  %v1770_v8 = vld [vmem:[%s2399_s24 + $0x1c] ss:$12 sps:$4 sm:$0xff]   ;;  %1392 = vmatmul.mubr.msk.bf16.vlgmr.msra.gmra.mrb[0].mxu0 %vm127_vm0, %v1763_v4 }
  0x3c   :  { %1518 = vmatmul.mubr.msk.bf16.vlgmr.msra.gmra.mrb[0].mxu1 %vm127_vm0, %v1764_v5  ;;  %176 = vmatprep.mubr.bf16.mxu0 %v1877_v0  ;;  %v1768_v9 = vld [vmem:[%s2399_s24 + $0x18] ss:$12 sps:$4 sm:$0xff]   ;;  %v1774_v10 = vld [vmem:[%s2399_s24 + $0x8] ss:$12 sps:$4 sm:$0xff]   ;;  %v1778_v13 = vld [vmem:[%s2399_s24 + $0x20] ss:$12 sps:$4 sm:$0xff]  }
  0x3d   :  { %455 = vmatprep.subr.bf16.mxu0 %v1767_v7  ;;  %v1773_v11 = vld [vmem:[%s2399_s24 + $0x34] ss:$12 sps:$4 sm:$0xff]   ;;  %1521 = vmatprep.subr.bf16.mxu1 %v1774_v10  ;;  %v1777_v14 = vld [vmem:[%s2399_s24 + $0x4c] ss:$12 sps:$4 sm:$0xff]   ;;  %v1781_v16 = vld [vmem:[%s2399_s24 + $0x64] ss:$12 sps:$4 sm:$0xff]  }
  0x3e   :  { %456 = vmatpush1.bf16.msra.mxu0 %v1765_v6  ;;  %1522 = vmatpush3.bf16.msra.mxu1 %v1774_v10  ;;  %v1775_v15 = vld [vmem:[%s2399_s24 + $0x48] ss:$12 sps:$4 sm:$0xff]   ;;  %v1782_v17 = vld [vmem:[%s2399_s24 + $0x38] ss:$12 sps:$4 sm:$0xff]   ;;  %v1779_v18 = vld [vmem:[%s2399_s24 + $0x60] ss:$12 sps:$4 sm:$0xff]  }
  0x3f   :  { %457 = vmatprep.subr.bf16.mxu0 %v1770_v8  ;;  %1523 = vmatprep.subr.bf16.mxu1 %v1778_v13  ;;  %v1785_v19 = vld [vmem:[%s2399_s24 + $0x7c] ss:$12 sps:$4 sm:$0xff]   ;;  %v1783_v21 = vld [vmem:[%s2399_s24 + $0x78] ss:$12 sps:$4 sm:$0xff]   ;;  %v1789_v22 = vld [vmem:[%s2399_s24 + $0x94] ss:$12 sps:$4 sm:$0xff]  }
  0x40   :  { %v1786_v20 = vld [vmem:[%s2399_s24 + $0x50] ss:$12 sps:$4 sm:$0xff]   ;;  %v1790_v23 = vld [vmem:[%s2399_s24 + $0x68] ss:$12 sps:$4 sm:$0xff]   ;;  %v1793_v25 = vld [vmem:[%s2399_s24 + $0xac] ss:$12 sps:$4 sm:$0xff]  }
  0x41   :  { %v1787_v24 = vld [vmem:[%s2399_s24 + $0x90] ss:$12 sps:$4 sm:$0xff]   ;;  %v1794_v26 = vld [vmem:[%s2399_s24 + $0x80] ss:$12 sps:$4 sm:$0xff]   ;;  %v1791_v27 = vld [vmem:[%s2399_s24 + $0xa8] ss:$12 sps:$4 sm:$0xff]  }
  0x42   :  { %458 = vmatpush1.bf16.msra.mxu0 %v1768_v9  ;;  %1524 = vmatpush3.bf16.msra.mxu1 %v1778_v13  ;;  %v1795_v28 = vld [vmem:[%s2399_s24 + $0x98] ss:$12 sps:$4 sm:$0xff]   ;;  %v1796_v29 = vld [vmem:[%s2399_s24 + $0xb0] ss:$12 sps:$4 sm:$0xff]   ;;  %v1396_v52 = vld [vmem:[%s2400_s23] ss:$0 sm:$0xff] }
  0x43   :  { %459 = vmatprep.subr.bf16.mxu0 %v1773_v11  ;;  %1393 = vmatmul.mubr.msk.bf16.gmra.mrb[4].mxu0 %vm127_vm0, %v1764_v5  ;;  %v764_v13 = vld [vmem:[%s2374_s8 + $0x8] sm:$0xff]  ;;  %s2401_s23 = sld [smem:[#allocation12_spill]] }
  0x44   :  { %487 = vmatprep.mubr.bf16.mxu0 %v1877_v0  ;;  %1525 = vmatprep.subr.bf16.mxu1 %v1782_v17 }
  0x46   :  { %460 = vmatpush1.bf16.msra.mxu0 %v1771_v12  ;;  %1526 = vmatpush3.bf16.msra.mxu1 %v1782_v17  ;;  %v763_v12 = vld [vmem:[%s2374_s8] sm:$0xff] }
  0x47   :  { %461 = vmatprep.subr.bf16.mxu0 %v1777_v14  ;;  %1527 = vmatprep.subr.bf16.mxu1 %v1786_v20 }
  0x4a   :  { %462 = vmatpush1.bf16.msra.mxu0 %v1775_v15  ;;  %1528 = vmatpush3.bf16.msra.mxu1 %v1786_v20  ;;  %v1880_v20 = vmov 0.0  }
  0x4b   :  { %463 = vmatprep.subr.bf16.mxu0 %v1781_v16  ;;  %1529 = vmatprep.subr.bf16.mxu1 %v1790_v23  ;;  %v1700_v16 = vpack.c.bf16 %v764_v13, %v763_v12 }
  0x4e   :  { %464 = vmatpush1.bf16.msra.mxu0 %v1779_v18  ;;  %1530 = vmatpush3.bf16.msra.mxu1 %v1790_v23  ;;  %v765_v18 = vld [vmem:[%s2374_s8 + $0x10] sm:$0xff] }
  0x4f   :  { %465 = vmatprep.subr.bf16.mxu0 %v1785_v19  ;;  %1531 = vmatprep.subr.bf16.mxu1 %v1794_v26 }
  0x52   :  { %466 = vmatpush1.bf16.msra.mxu0 %v1783_v21  ;;  %1532 = vmatpush3.bf16.msra.mxu1 %v1794_v26  ;;  %v767_v21 = vld [vmem:[%s2374_s8 + $0x20] sm:$0xff] }
  0x53   :  { %467 = vmatprep.subr.bf16.mxu0 %v1789_v22  ;;  %1533 = vmatprep.subr.bf16.mxu1 %v1795_v28  ;;  %v768_v22 = vld [vmem:[%s2374_s8 + $0x28] sm:$0xff]  ;;  %v663_v26 = vld [vmem:[%s2372_s6] sm:$0xff] }
  0x54   :  { %v1706_v23 = vpack.c.bf16 %v768_v22, %v767_v21 }
  0x56   :  { %468 = vmatpush1.bf16.msra.mxu0 %v1787_v24  ;;  %1534 = vmatpush3.bf16.msra.mxu1 %v1795_v28  ;;  %v769_v24 = vld [vmem:[%s2374_s8 + $0x30] sm:$0x3f] }
  0x57   :  { %469 = vmatprep.subr.bf16.mxu0 %v1793_v25  ;;  %1535 = vmatprep.subr.bf16.mxu1 %v1796_v29  ;;  %v762_v25 = vld [vmem:[%s2401_s23] sm:$0x3] }
  0x5a   :  { %470 = vmatpush1.bf16.msra.mxu0 %v1791_v27  ;;  %1536 = vmatpush3.bf16.msra.mxu1 %v1796_v29  ;;  %v664_v27 = vld [vmem:[%s2372_s6 + $0x8] sm:$0xff]  ;;  %v665_v29 = vld [vmem:[%s2372_s6 + $0x10] sm:$0xff] }
  0x5b   :  { %1699 = vmatprep.subr.bf16.mxu1 %v1878_v30  ;;  %1675 = vmatprep.subr.bf16.mxu0 %v1878_v30  ;;  %v1676_v28 = vpack.c.bf16 %v664_v27, %v663_v26 }
 0x10e   :  { %v168_v31 = vpop.f32.mrb[0].mxu0 }
 0x10f   :  { %v1519_v32 = vpop.f32.mrb[0].mxu1  ;;  %v241_v33 = vrot.slane %v168_v31, 7  ;;  %v170_v35 = vpop.f32.mrb[1].mxu0  ;;  %v666_v31 = vld [vmem:[%s2372_s6 + $0x18] sm:$0xff] }
 0x110   :  { %v261_v34 = vrot.slane %v1519_v32, 1  ;;  %v221_v36 = vpop.f32.mrb[1].mxu1  ;;  %v172_v37 = vpop.f32.mrb[2].mxu0  ;;  %v1679_v32 = vpack.c.bf16 %v666_v31, %v665_v29 }
 0x111   :  { %v1520_v38 = vpop.f32.mrb[2].mxu1  ;;  %v251_v39 = vsel %vm240_vm1, 0.0, %v241_v33  ;;  %v242_v40 = vrot.slane %v172_v37, 7  ;;  %v174_v42 = vpop.f32.mrb[3].mxu0  ;;  %v258_v45 = vrot.slane %v221_v36, 1  ;;  %v669_v36 = vld [vmem:[%s2372_s6 + $0x30] sm:$0xff] }
 0x112   :  { %v262_v41 = vrot.slane %v1520_v38, 1  ;;  %v224_v43 = vpop.f32.mrb[3].mxu1  ;;  %v270_v44 = vadd.f32 %v251_v39, %v170_v35  ;;  %v670_v37 = vld [vmem:[%s2372_s6 + $0x38] sm:$0xff]  ;;  %v856_v39 = vld [vmem:[%s2376_s10] sm:$0xff] }
 0x113   :  { %v259_v46 = vrot.slane %v224_v43, 1  ;;  %v243_v47 = vsel %vm240_vm1, %v241_v33, %v242_v40  ;;  %v667_v33 = vld [vmem:[%s2372_s6 + $0x20] sm:$0xff]  ;;  %v1685_v38 = vpack.c.bf16 %v670_v37, %v669_v36  ;;  %v857_v40 = vld [vmem:[%s2376_s10 + $0x8] sm:$0xff] }
 0x114   :  { %v263_v48 = vsel %vm257_vm2, %v261_v34, %v262_v41  ;;  %v271_v49 = vadd.f32 %v243_v47, %v174_v42  ;;  %v269_v8 = vsel %vm257_vm2, %v262_v41, 0.0  ;;  %v668_v34 = vld [vmem:[%s2372_s6 + $0x28] sm:$0xff]  ;;  %v1709_v41 = vpack.c.bf16 %v857_v40, %v856_v39  ;;  %v671_v42 = vld [vmem:[%s2372_s6 + $0x40] sm:$0xff] }
 0x115   :  { %v260_v50 = vsel %vm257_vm2, %v258_v45, %v259_v46  ;;  %v268_v51 = vsel %vm257_vm2, %v259_v46, 0.0  ;;  %v1682_v35 = vpack.c.bf16 %v668_v34, %v667_v33  ;;  %v672_v43 = vld [vmem:[%s2372_s6 + $0x48] sm:$0xff]  ;;  %v858_v45 = vld [vmem:[%s2376_s10 + $0x10] sm:$0xff]  ;;  %v859_v46 = vld [vmem:[%s2376_s10 + $0x18] sm:$0xff] }
 0x116   :  { %v274_v53 = vadd.f32 %v270_v44, %v260_v50  ;;  %v275_v54 = vadd.f32 %v271_v49, %v268_v51  ;;  %v178_v55 = vpop.f32.mrb[4].mxu0  ;;  %v1688_v44 = vpack.c.bf16 %v672_v43, %v671_v42  ;;  %v1712_v47 = vpack.c.bf16 %v859_v46, %v858_v45  ;;  %v674_v49 = vld [vmem:[%s2372_s6 + $0x58] sm:$0xff]  ;;  %v860_v51 = vld [vmem:[%s2376_s10 + $0x20] sm:$0xff] }
 0x117   :  { %v244_v57 = vrot.slane %v178_v55, 7  ;;  %v180_v58 = vpop.f32.mrb[5].mxu0  ;;  %v676_v55 = vld [vmem:[%s2372_s6 + $0x68] sm:$0xff]  ;;  %v1421_v33 = vld [vmem:[%s2371_s5] ss:$0 sm:$0xff] }
 0x118   :  { %v285_v56 = vadd.f32 %v1396_v52, %v274_v53  ;;  %v286_v59 = vadd.f32 %v1396_v52, %v275_v54  ;;  %v182_v60 = vpop.f32.mrb[6].mxu0  ;;  %v675_v54 = vld [vmem:[%s2372_s6 + $0x60] sm:$0xff] }
 0x119   :  { %v252_v62 = vsel %vm240_vm1, 0.0, %v244_v57  ;;  %v245_v63 = vrot.slane %v182_v60, 7  ;;  %v184_v1 = vpop.f32.mrb[7].mxu0  ;;  %v677_v60 = vld [vmem:[%s2372_s6 + $0x70] sm:$0xff] }
 0x11a   :  { %v289_v61 = vmax.f32 %v285_v56, 0.0  ;;  %v290_v2 = vmax.f32 %v286_v59, 0.0  ;;  %v272_v3 = vadd.f32 %v252_v62, %v180_v58  ;;  %v1694_v56 = vpack.c.bf16 %v676_v55, %v675_v54  ;;  %v863_v58 = vld [vmem:[%s2376_s10 + $0x38] sm:$0xff] }
 0x11b   :  { %v246_v4 = vsel %vm240_vm1, %v244_v57, %v245_v63  ;;  %v862_v57 = vld [vmem:[%s2376_s10 + $0x30] sm:$0xff]  ;;  %v612_v63 = vlaneseq }
 0x11c   :  { %v293_v5 = vpack.c.bf16 %v290_v2, %v289_v61  ;;  %v276_v6 = vadd.f32 %v272_v3, %v263_v48  ;;  %v273_v7 = vadd.f32 %v246_v4, %v184_v1  ;;  %v673_v48 = vld [vmem:[%s2372_s6 + $0x50] sm:$0xff]  ;;  %v1718_v59 = vpack.c.bf16 %v863_v58, %v862_v57  ;;  %v678_v61 = vld [vmem:[%s2372_s6 + $0x78] sm:$0xff]  ;;  %v952_v57 = vld [vmem:[%s2379_s13 + $0x8] sm:$0xff] }
 0x11d   :  { %v1691_v50 = vpack.c.bf16 %v674_v49, %v673_v48  ;;  %v1697_v62 = vpack.c.bf16 %v678_v61, %v677_v60 }
 0x11e   :  { %v287_v9 = vadd.f32 %v1396_v52, %v276_v6  ;;  %v277_v10 = vadd.f32 %v273_v7, %v269_v8  ;;  %488 = vmatmul.mubr.bf16.vlgmr.msra.gmra.mrb[8].mxu0 %v293_v5  ;;  %1537 = vmatprep.mubr.bf16.mxu1 %v293_v5  ;;  %v613_v5 = vshrl.u32 %v612_v63, 7 }
 0x11f   :  { %497 = vmatprep.mubr.bf16.mxu0 %v1877_v0  ;;  %v766_v0 = vld [vmem:[%s2374_s8 + $0x18] sm:$0xff]  ;;  %1677 = vmatpush3.bf16.msra.mxu0 %v1676_v28 }
 0x120   :  { %v288_v11 = vadd.f32 %v1396_v52, %v277_v10  ;;  %v291_v14 = vmax.f32 %v287_v9, 0.0  ;;  %v1703_v19 = vpack.c.bf16 %v766_v0, %v765_v18  ;;  %1678 = vmatprep.subr.bf16.mxu0 %v1878_v30  ;;  %v861_v52 = vld [vmem:[%s2376_s10 + $0x28] sm:$0xff]  ;;  %v614_v12 = vadd.s32 8, %v613_v5 }
 0x121   :  { %v1715_v53 = vpack.c.bf16 %v861_v52, %v860_v51  ;;  %v619_v18 = vand.u32 1, %v613_v5 }
 0x122   :  { %v292_v15 = vmax.f32 %v288_v11, 0.0  ;;  %v626_v21 = vand.u32 1, %v614_v12 }
 0x123   :  { %1680 = vmatpush3.bf16.msra.mxu0 %v1679_v32  ;;  %vm639_vm6 = vcmp.eq.s32.totalorder %v619_v18, 0 }
 0x124   :  { %v294_v17 = vpack.c.bf16 %v292_v15, %v291_v14  ;;  %1681 = vmatprep.subr.bf16.mxu0 %v1878_v30  ;;  %vm640_vm7 = vcmp.eq.s32.totalorder %v626_v21, 0  ;;  %v954_v21 = vld [vmem:[%s2379_s13 + $0x18] sm:$0xff] }
 0x125   :  { %v1423_v49 = vsel %vm640_vm7, 1.0, %v1880_v20 }
 0x126   :  { %498 = vmatmul.mubr.bf16.gmra.mrb[12].mxu0 %v294_v17  ;;  %1538 = vmatmul.mubr.bf16.vlgmr.msra.gmra.mrb[4].mxu1 %v294_v17 }
 0x127   :  { %1701 = vmatpush3.bf16.msra.mxu1 %v1700_v16  ;;  %1590 = vmatprep.mubr.msk.f32.mxu1 %vm1879_vm3, %v1880_v20 }
 0x128   :  { %1702 = vmatprep.subr.bf16.mxu1 %v1878_v30  ;;  %1573 = vmatprep.mubr.msk.f32.mxu0 %vm1879_vm3, %v1880_v20 }
 0x129   :  { %1683 = vmatpush3.bf16.msra.mxu0 %v1682_v35 }
 0x12a   :  { %1684 = vmatprep.subr.bf16.mxu0 %v1878_v30 }
 0x12b   :  { %1704 = vmatpush3.bf16.msra.mxu1 %v1703_v19 }
 0x12c   :  { %1705 = vmatprep.subr.bf16.mxu1 %v1878_v30 }
 0x12d   :  { %1686 = vmatpush3.bf16.msra.mxu0 %v1685_v38 }
 0x12e   :  { %1687 = vmatprep.subr.bf16.mxu0 %v1878_v30 }
 0x12f   :  { %1707 = vmatpush3.bf16.msra.mxu1 %v1706_v23 }
 0x130   :  { %1588 = vmatprep.subr.mxu1 %v1880_v20 }
 0x131   :  { %1689 = vmatpush3.bf16.msra.mxu0 %v1688_v44 }
 0x132   :  { %1690 = vmatprep.subr.bf16.mxu0 %v1878_v30 }
 0x133   :  { %1589 = vmatpush3.msk.msra.mxu1 %vm781_vm4, %v769_v24 }
 0x134   :  { %1591 = vmatmul.mubr.msk.f32.vlgmr.msra.gmra.mrb[8].mxu1 %vm777_vm5, %v762_v25  ;;  %1708 = vmatprep.subr.bf16.mxu1 %v1878_v30 }
 0x135   :  { %1609 = vmatprep.mubr.msk.f32.mxu1 %vm1879_vm3, %v1880_v20  ;;  %1710 = vmatpush3.bf16.msra.mxu1 %v1709_v41 }
 0x136   :  { %1711 = vmatprep.subr.bf16.mxu1 %v1878_v30  ;;  %1692 = vmatpush3.bf16.msra.mxu0 %v1691_v50 }
 0x137   :  { %1693 = vmatprep.subr.bf16.mxu0 %v1878_v30 }
 0x139   :  { %1713 = vmatpush3.bf16.msra.mxu1 %v1712_v47  ;;  %v1422_v47 = vsel %vm639_vm6, 1.0, %v1880_v20 }
 0x13a   :  { %1714 = vmatprep.subr.bf16.mxu1 %v1878_v30  ;;  %1695 = vmatpush3.bf16.msra.mxu0 %v1694_v56  ;;  %v951_v56 = vld [vmem:[%s2379_s13] sm:$0xff] }
 0x13b   :  { %1696 = vmatprep.subr.bf16.mxu0 %v1878_v30 }
 0x13d   :  { %1716 = vmatpush3.bf16.msra.mxu1 %v1715_v53  ;;  %v1425_v53 = vld [vmem:[%s2375_s9] ss:$0 sm:$0xff] }
 0x13e   :  { %1717 = vmatprep.subr.bf16.mxu1 %v1878_v30  ;;  %1698 = vmatpush3.bf16.msra.mxu0 %v1697_v62 }
 0x13f   :  { %1726 = vmatprep.subr.bf16.mxu0 %v1878_v30 }
 0x141   :  { %1719 = vmatpush3.bf16.msra.mxu1 %v1718_v59 }
 0x142   :  { %1720 = vmatprep.subr.bf16.mxu1 %v1878_v30 }
 0x1f1   :  { %v489_v1 = vpop.f32.mrb[8].mxu0 }
 0x1f2   :  { %v561_v2 = vrot.slane %v489_v1, 7  ;;  %v491_v3 = vpop.f32.mrb[9].mxu0 }
 0x1f3   :  { %v493_v4 = vpop.f32.mrb[10].mxu0 }
 0x1f4   :  { %v571_v6 = vsel %vm240_vm1, 0.0, %v561_v2  ;;  %v562_v7 = vrot.slane %v493_v4, 7  ;;  %v495_v8 = vpop.f32.mrb[11].mxu0 }
 0x1f5   :  { %v589_v9 = vadd.f32 %v571_v6, %v491_v3 }
 0x1f6   :  { %v563_v10 = vsel %vm240_vm1, %v561_v2, %v562_v7  ;;  %v1721_v2 = vpack.c.bf16 %v952_v57, %v951_v56  ;;  %v1432_v56 = vld [vmem:[#allocation5] ss:$0 sm:$0xff] }
 0x1f7   :  { %v590_v11 = vadd.f32 %v563_v10, %v495_v8 }
 0x1f9   :  { %v499_v13 = vpop.f32.mrb[12].mxu0  ;;  %v1539_v14 = vpop.f32.mrb[4].mxu1 }
 0x1fa   :  { %v564_v15 = vrot.slane %v499_v13, 7  ;;  %v501_v16 = vpop.f32.mrb[13].mxu0  ;;  %v542_v17 = vpop.f32.mrb[5].mxu1  ;;  %v580_v22 = vrot.slane %v1539_v14, 1  ;;  %v946_v13 = vld [vmem:[%s2378_s12] sm:$0xff]  ;;  %v947_v14 = vld [vmem:[%s2378_s12 + $0x8] sm:$0xff] }
 0x1fb   :  { %v503_v0 = vpop.f32.mrb[14].mxu0  ;;  %v1540_v19 = vpop.f32.mrb[6].mxu1  ;;  %v577_v29 = vrot.slane %v542_v17, 1  ;;  %v1727_v18 = vpack.c.bf16 %v947_v14, %v946_v13 }
 0x1fc   :  { %v572_v23 = vsel %vm240_vm1, 0.0, %v564_v15  ;;  %v565_v24 = vrot.slane %v503_v0, 7  ;;  %v581_v25 = vrot.slane %v1540_v19, 1  ;;  %v505_v26 = vpop.f32.mrb[15].mxu0  ;;  %v545_v27 = vpop.f32.mrb[7].mxu1  ;;  %v953_v19 = vld [vmem:[%s2379_s13 + $0x10] sm:$0xff] }
 0x1fd   :  { %v591_v28 = vadd.f32 %v572_v23, %v501_v16  ;;  %v578_v31 = vrot.slane %v545_v27, 1  ;;  %v948_v23 = vld [vmem:[%s2378_s12 + $0x10] sm:$0xff]  ;;  %v950_v27 = vld [vmem:[%s2378_s12 + $0x20] sm:$0xff] }
 0x1fe   :  { %v582_v32 = vsel %vm257_vm2, %v580_v22, %v581_v25  ;;  %v566_v34 = vsel %vm240_vm1, %v564_v15, %v565_v24  ;;  %v588_v39 = vsel %vm257_vm2, %v581_v25, 0.0  ;;  %v1724_v22 = vpack.c.bf16 %v954_v21, %v953_v19  ;;  %v949_v24 = vld [vmem:[%s2378_s12 + $0x18] sm:$0xff] }
 0x1ff   :  { %v595_v35 = vadd.f32 %v591_v28, %v582_v32  ;;  %v592_v36 = vadd.f32 %v566_v34, %v505_v26  ;;  %v579_v37 = vsel %vm257_vm2, %v577_v29, %v578_v31  ;;  %v587_v38 = vsel %vm257_vm2, %v578_v31, 0.0  ;;  %v955_v26 = vld [vmem:[%s2379_s13 + $0x20] sm:$0xff] }
 0x200   :  { %v593_v40 = vadd.f32 %v589_v9, %v579_v37  ;;  %v594_v41 = vadd.f32 %v590_v11, %v587_v38  ;;  %v1730_v25 = vpack.c.bf16 %v949_v24, %v948_v23  ;;  %v1428_v28 = vld [vmem:[%s2377_s11] ss:$0 sm:$0xff] }
 0x201   :  { %v606_v42 = vadd.f32 %v1421_v33, %v595_v35  ;;  %v596_v43 = vadd.f32 %v592_v36, %v588_v39  ;;  %v1424_v34 = vld [vmem:[%s2373_s7] ss:$0 sm:$0xff] }
 0x202   :  { %v604_v44 = vadd.f32 %v1421_v33, %v593_v40  ;;  %v605_v45 = vadd.f32 %v1421_v33, %v594_v41  ;;  %v1120_v39 = vld [vmem:[%s2381_s15] sm:$0xff]  ;;  %v1121_v40 = vld [vmem:[%s2381_s15 + $0x8] sm:$0xff] }
 0x203   :  { %v610_v46 = vmax.f32 %v606_v42, 0.0  ;;  %v607_v48 = vadd.f32 %v1421_v33, %v596_v43  ;;  %v1125_v41 = vld [vmem:[%s2382_s16] sm:$0xff]  ;;  %v1739_v42 = vpack.c.bf16 %v1121_v40, %v1120_v39  ;;  %v1126_v43 = vld [vmem:[%s2382_s16 + $0x8] sm:$0xff] }
 0x204   :  { %v608_v50 = vmax.f32 %v604_v44, 0.0  ;;  %v609_v51 = vmax.f32 %v605_v45, 0.0  ;;  %v1122_v44 = vld [vmem:[%s2381_s15 + $0x10] sm:$0xff]  ;;  %v1123_v45 = vld [vmem:[%s2381_s15 + $0x18] sm:$0xff] }
 0x205   :  { %v611_v52 = vmax.f32 %v607_v48, 0.0  ;;  %v647_v58 = vmul.f32 %v1422_v47, %v610_v46  ;;  %v1733_v46 = vpack.c.bf16 %v1126_v43, %v1125_v41  ;;  %v1128_v48 = vld [vmem:[%s2382_s16 + $0x18] sm:$0xff] }
 0x206   :  { %v645_v54 = vmul.f32 %v1422_v47, %v608_v50  ;;  %v646_v55 = vmul.f32 %v1423_v49, %v609_v51  ;;  %v1127_v47 = vld [vmem:[%s2382_s16 + $0x10] sm:$0xff]  ;;  %v1124_v51 = vld [vmem:[%s2381_s15 + $0x20] sm:$0xff] }
 0x207   :  { %v648_v59 = vmul.f32 %v1423_v49, %v611_v52  ;;  %v851_v60 = vpop.f32.mrb[8].mxu1  ;;  %v1742_v49 = vpack.c.bf16 %v1123_v45, %v1122_v44  ;;  %v1736_v50 = vpack.c.bf16 %v1128_v48, %v1127_v47  ;;  %v1129_v52 = vld [vmem:[%s2382_s16 + $0x20] sm:$0xff] }
 0x208   :  { %v649_v61 = vadd.f32 %v646_v55, %v645_v54  ;;  %v852_v62 = vadd.f32 %v1425_v53, %v851_v60  ;;  %v1592_v63 = vpop.f32.mrb[9].mxu1 }
 0x209   :  { %v656_v1 = vadd.f32 %v648_v59, %v647_v58 }
 0x20a   :  { %v650_v3 = vrot.slane %v649_v61, 4  ;;  %v855_v4 = vmax.f32 %v852_v62, 0.0 }
 0x20b   :  { %v657_v5 = vrot.slane %v656_v1, 4 }
 0x20c   :  { %v651_v6 = vadd.f32 %v650_v3, %v649_v61  ;;  %1610 = vmatmul.mubr.msk.f32.vlgmr.msra.gmra.mrb[10].mxu1 %vm871_vm8, %v855_v4  ;;  %v1285_v4 = vld [vmem:[%s2384_s18] sm:$0xff] }
 0x20d   :  { %v658_v7 = vadd.f32 %v657_v5, %v656_v1  ;;  %1722 = vmatpush3.bf16.msra.mxu1 %v1721_v2  ;;  %1622 = vmatprep.mubr.msk.f32.mxu1 %vm1879_vm3, %v1880_v20  ;;  %v1286_v5 = vld [vmem:[%s2384_s18 + $0x8] sm:$0xff] }
 0x20e   :  { %v652_v8 = vrot.slane %v651_v6, 2  ;;  %1723 = vmatprep.subr.bf16.mxu1 %v1878_v30 }
 0x20f   :  { %v659_v9 = vrot.slane %v658_v7, 2 }
 0x210   :  { %v653_v10 = vadd.f32 %v652_v8, %v651_v6  ;;  %v1745_v6 = vpack.c.bf16 %v1286_v5, %v1285_v4 }
 0x211   :  { %v660_v11 = vadd.f32 %v659_v9, %v658_v7  ;;  %1725 = vmatpush3.bf16.msra.mxu1 %v1724_v22  ;;  %v1287_v7 = vld [vmem:[%s2384_s18 + $0x10] sm:$0xff] }
 0x212   :  { %v654_v12 = vrot.slane %v653_v10, 1  ;;  %1620 = vmatprep.subr.mxu1 %v1880_v20 }
 0x213   :  { %v661_v15 = vrot.slane %v660_v11, 1 }
 0x214   :  { %v655_v16 = vadd.f32 %v654_v12, %v653_v10  ;;  %v1436_v12 = vld [vmem:[%s2383_s17] ss:$0 sm:$0xff] }
 0x215   :  { %v662_v17 = vadd.f32 %v661_v15, %v660_v11  ;;  %1621 = vmatpush3.msra.mxu1 %v955_v26 }
 0x216   :  { %1732 = vmatprep.subr.bf16.mxu1 %v1878_v30 }
 0x217   :  { %v689_v0 = vsel %vm688_vm9, %v662_v17, %v655_v16  ;;  %v1437_v16 = vld [vmem:[%s2385_s19] ss:$0 sm:$0xff] }
 0x218   :  { %1574 = vmatmul.mubr.f32.vlgmr.msra.gmra.mrb[16].mxu0 %v689_v0 }
 0x219   :  { %1728 = vmatpush3.bf16.msra.mxu0 %v1727_v18  ;;  %1635 = vmatprep.mubr.msk.f32.mxu0 %vm1879_vm3, %v1880_v20 }
 0x21a   :  { %1729 = vmatprep.subr.bf16.mxu0 %v1878_v30 }
 0x21d   :  { %1731 = vmatpush3.bf16.msra.mxu0 %v1730_v25 }
 0x21e   :  { %1633 = vmatprep.subr.mxu0 %v1880_v20 }
 0x221   :  { %1634 = vmatpush3.msra.mxu0 %v950_v27 }
 0x222   :  { %1738 = vmatprep.subr.bf16.mxu0 %v1878_v30 }
 0x2df   :  { %v941_v29 = vpop.f32.mrb[10].mxu1 }
 0x2e0   :  { %v942_v31 = vadd.f32 %v1428_v28, %v941_v29  ;;  %v1611_v32 = vpop.f32.mrb[11].mxu1 }
 0x2e2   :  { %v945_v33 = vmax.f32 %v942_v31, 0.0 }
 0x2e4   :  { %1623 = vmatmul.mubr.msk.f32.vlgmr.msra.gmra.mrb[12].mxu1 %vm956_vm10, %v945_v33 }
 0x2e5   :  { %1648 = vmatprep.mubr.msk.f32.mxu1 %vm1879_vm3, %v1880_v20  ;;  %1734 = vmatpush3.bf16.msra.mxu1 %v1733_v46 }
 0x2e6   :  { %1735 = vmatprep.subr.bf16.mxu1 %v1878_v30 }
 0x2e9   :  { %1737 = vmatpush3.bf16.msra.mxu1 %v1736_v50 }
 0x2ea   :  { %1646 = vmatprep.subr.mxu1 %v1880_v20 }
 0x2eb   :  { %v757_v35 = vpop.f32.mrb[16].mxu0 }
 0x2ec   :  { %v758_v36 = vadd.f32 %v1424_v34, %v757_v35  ;;  %v1575_v37 = vpop.f32.mrb[17].mxu0 }
 0x2ed   :  { %1647 = vmatpush3.msra.mxu1 %v1129_v52 }
 0x2ee   :  { %v761_v38 = vmax.f32 %v758_v36, 0.0  ;;  %1744 = vmatprep.subr.bf16.mxu1 %v1878_v30 }
 0x2f0   :  { %1636 = vmatmul.mubr.msk.f32.vlgmr.msra.gmra.mrb[18].mxu0 %vm956_vm10, %v761_v38 }
 0x2f1   :  { %1661 = vmatprep.mubr.msk.f32.mxu0 %vm1879_vm3, %v1880_v20  ;;  %1740 = vmatpush3.bf16.msra.mxu0 %v1739_v42 }
 0x2f2   :  { %1741 = vmatprep.subr.bf16.mxu0 %v1878_v30 }
 0x2f5   :  { %1743 = vmatpush3.bf16.msra.mxu0 %v1742_v49 }
 0x2f6   :  { %1659 = vmatprep.subr.mxu0 %v1880_v20 }
 0x2f9   :  { %1660 = vmatpush3.msra.mxu0 %v1124_v51 }
 0x3b7   :  { %v1026_v53 = vpop.f32.mrb[12].mxu1 }
 0x3b8   :  { %v1624_v54 = vpop.f32.mrb[13].mxu1 }
 0x3c3   :  { %v1099_v55 = vpop.f32.mrb[18].mxu0 }
 0x3c4   :  { %v1100_v57 = vadd.f32 %v1099_v55, %v1026_v53  ;;  %v1637_v58 = vpop.f32.mrb[19].mxu0 }
 0x3c6   :  { %v1110_v59 = vadd.f32 %v1432_v56, %v1100_v57 }
 0x3c8   :  { %v1433_v60 = vmul.f32 -1.442695, %v1110_v59 }
 0x3ca   :  { %1797 = vpow2.f32 %v1433_v60 }
 0x3d4   :  { %v1798_v61 = vpop.eup %1797 }
 0x3d5   :  { %v1114_v62 = vadd.f32 1.0, %v1798_v61 }
 0x3d7   :  { %1799 = vrcp.f32 %v1114_v62 }
 0x3e1   :  { %v1800_v63 = vpop.eup %1799 }
 0x3e2   :  { %v1117_v1 = vmul.f32 %v1800_v63, %v761_v38  ;;  %v1118_v2 = vsub.f32 1.0, %v1800_v63 }
 0x3e4   :  { %1662 = vmatmul.mubr.msk.f32.vlgmr.msra.gmra.mrb[20].mxu0 %vm956_vm10, %v1117_v1  ;;  %v1119_v3 = vmul.f32 %v1118_v2, %v945_v33 }
 0x3e6   :  { %1649 = vmatmul.mubr.msk.f32.vlgmr.msra.gmra.mrb[14].mxu1 %vm956_vm10, %v1119_v3 }
 0x3e7   :  { %1672 = vmatprep.mubr.msk.f32.mxu1 %vm1879_vm3, %v1880_v20  ;;  %1746 = vmatpush3.bf16.msra.mxu1 %v1745_v6  ;;  %v1288_v20 = vld [vmem:[%s2384_s18 + $0x18] sm:$0xff]  ;;  %s1881_s18 = smov [#allocation7]  }
 0x3e8   :  { %1747 = vmatprep.subr.bf16.mxu1 %v1878_v30  ;;  %v1748_v8 = vpack.c.bf16 %v1288_v20, %v1287_v7  ;;  %s1377_s1 = sshll.u32 %s1881_s18, 4  ;;  %s1378_s1 = int_to_ptr.vmem [resolvable:$true] %s1377_s1 }
 0x3e9   :  { %s1845_s9 = scalar_lea.vmem %s1378_s1, 32  ;;  %p1850_p3 = scmp.lt.s32.totalorder %s1378_s1, %s1378_s1 }
 0x3ea   :  { %p1846_p2 = scmp.ne.s32.totalorder %s1378_s1, %s1845_s9  ;;  %p1851_p4 = scmp.lt.s32.totalorder %s1845_s9, %s1845_s9 }
 0x3eb   :  { %1749 = vmatpush3.bf16.msra.mxu1 %v1748_v8 }
 0x3ec   :  { %p1852_p5 = por %p1851_p4, %p1850_p3 }
 0x3ee   :  { %p1853_p6 = pnand %p1852_p5, %p1846_p2 }
 0x4b7   :  { %v1272_v9 = vpop.f32.mrb[20].mxu0 }
 0x4b8   :  { %v1663_v10 = vpop.f32.mrb[21].mxu0 }
 0x4b9   :  { %v1199_v11 = vpop.f32.mrb[14].mxu1 }
 0x4ba   :  { %v1273_v13 = vadd.f32 %v1272_v9, %v1199_v11  ;;  %v1650_v14 = vpop.f32.mrb[15].mxu1 }
 0x4bc   :  { %v1283_v30 = vadd.f32 %v1436_v12, %v1273_v13 }
 0x4be   :  { %v1284_v15 = vmax.f32 %v1283_v30, 0.0 }
 0x4c0   :  { %1673 = vmatmul.mubr.msk.f32.vlgmr.msra.gmra.mrb[16].mxu1 %vm1296_vm11, %v1284_v15 }
 0x593   :  { %v1366_v17 = vpop.f32.mrb[16].mxu1 }
 0x594   :  { %v1367_v18 = vadd.f32 %v1437_v16, %v1366_v17  ;;  %v1674_v0 = vpop.f32.mrb[17].mxu1 }
 0x596   :  { %1370 = vst [vmem:[#allocation7] sm:$0x3] %v1367_v18 }
 0x597   :  { %1856 = shalt.err (!%p1853_p6)
}
 0x598   :  { %s2402_s23 = sld [smem:[#allocation16_spill]] }
 0x59e   :  { %s1857_s25 = scalar_lea.hbm %s2402_s23, 32 }
 0x59f   :  { %p1858_p7 = scmp.ne.s32.totalorder %s2402_s23, %s1857_s25  ;;  %p1861_p8 = scmp.lt.u32.totalorder %s1857_s25, %s2402_s23 }
 0x5a1   :  { %p1863_p9 = pnand %p1861_p8, %p1858_p7 }
 0x5a3   :  { %1866 = shalt.err (!%p1863_p9)
}
 0x5a4   :  { %1380 = dma.vmem_to_hbm [thread:$0]  %s1378_s1, 32, %s2402_s23, [#allocation4]  }
 0x5a5   :  { %1871 = dma.done.wait [#allocation4], 32  }
 0x5a6   :  { %1872 = vsyncadd [#allocation4], 4294967264 }
 0x5a7   :  { %1384 = vsyncpa [#allocation3], 1 }
 0x5a8   :  { %1385 = vsyncpa [#allocation6], 1 }
 0x5a9   :  { %1386 = vsyncpa [#allocation4], 1 }

</bundles_post_ra>
